<compile_context>
chip_gen: v6e
topology: v6e:2x2x1
jax: 0.10.0
libtpu: 0.0.40
codegen_flags: <defaults>
</compile_context>

<pallas_src>
import functools

import jax
import jax.numpy as jnp
from jax.experimental import pallas as pl
from jax.experimental.pallas import tpu as pltpu


# ----------------------------------------------------------------------------
# In-kernel helpers
# ----------------------------------------------------------------------------
def _gelu(x, approx):
    if approx:
        # tanh-approx GELU: routes most of the cost to the (otherwise idle) EUP
        # slot; used by default on v5e where the exact-erf polynomial would
        # land on the f32 VALU slots and become the binding slot for small H.
        return jax.nn.gelu(x, approximate=True)
    # PyTorch nn.GELU() default: exact erf-based GELU.
    return 0.5 * x * (1.0 + jax.lax.erf(x * 0.7071067811865476))


def _add_norm(y, x_f32, g_ref, be_ref, eps):
    """AddNorm: LayerNorm(dropout(Y) + X); dropout = identity at inference."""
    # TODO(synk): training-mode stochastic dropout (pltpu.prng_*) not implemented.
    z = y + x_f32
    mean = jnp.mean(z, axis=-1, keepdims=True)
    c = z - mean
    var = jnp.mean(c * c, axis=-1, keepdims=True)
    zn = c * jax.lax.rsqrt(var + eps)
    return zn * g_ref[...].astype(jnp.float32) + be_ref[...].astype(jnp.float32)


def ffn_kernel_resident(x_ref, w1_ref, b1_ref, w2_ref, b2_ref, g_ref, be_ref,
                        o_ref, *, eps, approx_gelu):
    """Single k-step: whole W1/W2 are VMEM resident; write o_ref directly."""
    x = x_ref[...]                                                 # (tr, H)
    h = jnp.dot(x, w1_ref[...], preferred_element_type=jnp.float32)
    h = _gelu(h + b1_ref[...].astype(jnp.float32), approx_gelu)
    y = jnp.dot(h.astype(x.dtype), w2_ref[...],
                preferred_element_type=jnp.float32)
    y = y + b2_ref[...].astype(jnp.float32)
    o_ref[...] = _add_norm(y, x.astype(jnp.float32), g_ref, be_ref,
                           eps).astype(o_ref.dtype)


def ffn_kernel_streamed(x_ref, w1_ref, b1_ref, w2_ref, b2_ref, g_ref, be_ref,
                        o_ref, acc_ref, *, eps, approx_gelu):
    """k-tiled over the 4H axis with an f32 VMEM accumulator."""
    k = pl.program_id(1)

    @pl.when(k == 0)
    def _():
        acc_ref[...] = jnp.zeros_like(acc_ref)

    x = x_ref[...]                                                 # (tr, H)
    h = jnp.dot(x, w1_ref[...], preferred_element_type=jnp.float32)
    h = _gelu(h + b1_ref[...].astype(jnp.float32), approx_gelu)
    acc_ref[...] += jnp.dot(h.astype(x.dtype), w2_ref[...],
                            preferred_element_type=jnp.float32)

    @pl.when(k == pl.num_programs(1) - 1)
    def _():
        y = acc_ref[...] + b2_ref[...].astype(jnp.float32)
        o_ref[...] = _add_norm(y, x.astype(jnp.float32), g_ref, be_ref,
                               eps).astype(o_ref.dtype)


# ----------------------------------------------------------------------------
# Host-side tiling / budget selection
# ----------------------------------------------------------------------------
def _round_up(a, b):
    return (a + b - 1) // b * b


def _device_kind():
    try:
        return jax.devices()[0].device_kind.lower()
    except Exception:
        return ""


def _is_v5e():
    k = _device_kind()
    return ("v5e" in k) or ("v5 lite" in k) or ("v5lite" in k)


def _vmem_capacity_bytes():
    try:
        cap = getattr(pltpu.get_tpu_info(), "vmem_capacity_bytes", None)
        if cap:
            return int(cap)
    except Exception:
        pass
    kind = _device_kind()
    if "v7" in kind:
        return 64 * 2 ** 20
    if kind:
        return 128 * 2 ** 20
    return 64 * 2 ** 20          # unknown: be conservative


def _footprint(tr, tk, H, H4, ib, resident):
    """Rough VMEM bytes for one pipelined generation of the kernel."""
    io = 2 * 2 * tr * H * ib                       # x + out tiles, double buffered
    bias = 2 * (H4 + 3 * H) * max(ib, 4)           # b1, b2, gamma, beta blocks
    if resident:
        w = 2 * (H * H4 + H4 * H) * ib             # resident W1/W2 (2 bufs alloc'd)
        work = tr * H4 * 4 + 2 * tr * H * 4        # f32 intermediate + epilogue temps
    else:
        w = 2 * (H * tk + tk * H) * ib             # streamed W1/W2 chunks, 2 bufs
        work = tr * H * 4 + tr * tk * 4 + 2 * tr * H * 4   # acc + partial + temps
    return io + bias + w + work


_ROW_CANDS = (1024, 768, 512, 384, 256, 128, 64, 32, 16, 8)
_HEADROOM = 1.25


def _pick_rows(rows, target, fits):
    """Largest row tile <= target that divides rows (no pad) and fits VMEM."""
    cands = [c for c in _ROW_CANDS if c <= target]
    for c in cands:
        if rows % c == 0 and fits(c):
            return c
    if rows <= target and fits(rows):
        return rows                       # single full tile (block == full dim)
    for c in cands:                       # last resort: pad rows to a multiple
        if fits(c):
            return c
    return None


def _select_tiling(rows, H, H4, ib, budget, tile_rows, k_tile, v5e):
    def fits(tr, tk, resident):
        return _footprint(tr, tk, H, H4, ib, resident) * _HEADROOM <= budget

    if tile_rows is not None:
        target = tile_rows
    elif v5e:
        target = 256          # v5e roofline knee (~240 flops/byte) sits here
    elif budget >= 80 * 2 ** 20:
        target = 1024         # 128 MiB chips (v5e/v6e): go MXU-bound
    else:
        target = 512          # 64 MiB chips (v7x)

    # Resident-weights fast path.
    if k_tile is None or k_tile >= H4:
        tr = _pick_rows(rows, target, lambda c: fits(c, H4, True))
        if tr is not None and tr >= min(128, rows):
            fp = _footprint(tr, H4, H, H4, ib, True)
            vmem_limit = int(min(budget, max(2 * fp, 32 * 2 ** 20)))
            return tr, H4, True, vmem_limit

    # Streamed path: pick tk (prefer >= 512), then the row tile.
    tk = None
    for c in ([k_tile] if k_tile else []) + [512, 384, 256, 128]:
        if c and c <= H4 and H4 % c == 0 and (c % 128 == 0 or c == H4):
            tk = c
            break
    if tk is None:
        tk = H4
    tr = _pick_rows(rows, target, lambda c: fits(c, tk, False))
    if tr is None:
        for c in (256, 128):              # shrink tk before giving up on tr
            if c < tk and H4 % c == 0:
                tr = _pick_rows(rows, target, lambda r, c=c: fits(r, c, False))
                if tr is not None:
                    tk = c
                    break
    if tr is None:
        tr = rows if rows < 128 else 128  # last resort; may exceed the budget
    fp = _footprint(tr, tk, H, H4, ib, False)
    vmem_limit = int(min(budget, max(2 * fp, 32 * 2 ** 20)))
    return tr, tk, False, vmem_limit


# ----------------------------------------------------------------------------
# pallas_call wrapper
# ----------------------------------------------------------------------------
@functools.partial(jax.jit, static_argnames=("tr", "tk", "resident",
                                             "vmem_limit", "eps", "approx_gelu"))
def _ffn(x, w1, b1, w2, b2, gamma, beta, *, tr, tk, resident, vmem_limit,
         eps, approx_gelu):
    B, S, H = x.shape
    H4 = w1.shape[1]
    rows = B * S

    x2 = x.reshape(rows, H)
    rows_p = _round_up(rows, tr)
    if rows_p != rows:
        # Only reached when no tile size divides batch*seq; common shapes skip
        # this extra HBM pass entirely (padded rows are sliced away below).
        x2 = jnp.pad(x2, ((0, rows_p - rows), (0, 0)))

    b1_2 = b1.reshape(1, H4)
    b2_2 = b2.reshape(1, H)
    g2 = gamma.reshape(1, H)
    be2 = beta.reshape(1, H)

    if resident:
        kernel = functools.partial(ffn_kernel_resident, eps=eps,
                                   approx_gelu=approx_gelu)
        grid = (rows_p // tr,)
        in_specs = [
            pl.BlockSpec((tr, H), lambda i: (i, 0)),    # x tile
            pl.BlockSpec((H, H4), lambda i: (0, 0)),    # W1 (resident)
            pl.BlockSpec((1, H4), lambda i: (0, 0)),    # b1
            pl.BlockSpec((H4, H), lambda i: (0, 0)),    # W2 (resident)
            pl.BlockSpec((1, H), lambda i: (0, 0)),     # b2
            pl.BlockSpec((1, H), lambda i: (0, 0)),     # gamma
            pl.BlockSpec((1, H), lambda i: (0, 0)),     # beta
        ]
        out_specs = pl.BlockSpec((tr, H), lambda i: (i, 0))
        scratch = []
        dims = ("parallel",)
    else:
        kernel = functools.partial(ffn_kernel_streamed, eps=eps,
                                   approx_gelu=approx_gelu)
        grid = (rows_p // tr, H4 // tk)
        in_specs = [
            pl.BlockSpec((tr, H), lambda i, k: (i, 0)),   # x tile
            pl.BlockSpec((H, tk), lambda i, k: (0, k)),   # W1 column chunk
            pl.BlockSpec((1, tk), lambda i, k: (0, k)),   # b1 chunk
            pl.BlockSpec((tk, H), lambda i, k: (k, 0)),   # W2 row chunk
            pl.BlockSpec((1, H), lambda i, k: (0, 0)),    # b2
            pl.BlockSpec((1, H), lambda i, k: (0, 0)),    # gamma
            pl.BlockSpec((1, H), lambda i, k: (0, 0)),    # beta
        ]
        out_specs = pl.BlockSpec((tr, H), lambda i, k: (i, 0))
        scratch = [pltpu.VMEM((tr, H), jnp.float32)]
        dims = ("parallel", "arbitrary")

    out = pl.pallas_call(
        kernel,
        out_shape=jax.ShapeDtypeStruct((rows_p, H), x.dtype),
        grid_spec=pltpu.PrefetchScalarGridSpec(
            num_scalar_prefetch=0,
            grid=grid,
            in_specs=in_specs,
            out_specs=out_specs,
            scratch_shapes=scratch),
        compiler_params=pltpu.CompilerParams(
            dimension_semantics=dims,
            vmem_limit_bytes=vmem_limit),
    )(x2, w1, b1_2, w2, b2_2, g2, be2)

    if rows_p != rows:
        out = out[:rows]
    return out.reshape(B, S, H)


def feed_forward_net(x, w1, b1, w2, b2, gamma, beta, *,
                     tile_rows=None, k_tile=None, eps=1e-12, approx_gelu=None):
    """FeedForwardNet forward. x: (B, S, H); w1: (H, 4H); w2: (4H, H)."""
    B, S, H = x.shape
    H4 = w1.shape[1]
    rows = B * S
    ib = jnp.dtype(x.dtype).itemsize

    v5e = _is_v5e()
    if approx_gelu is None:
        # exact erf GELU everywhere except v5e (VALU-bound erf polynomial).
        approx_gelu = v5e

    budget = int(0.80 * _vmem_capacity_bytes())
    tr, tk, resident, vmem_limit = _select_tiling(rows, H, H4, ib, budget,
                                                  tile_rows, k_tile, v5e)
    return _ffn(x, w1, b1, w2, b2, gamma, beta,
                tr=tr, tk=tk, resident=resident, vmem_limit=vmem_limit,
                eps=float(eps), approx_gelu=bool(approx_gelu))


# ----------------------------------------------------------------------------
# Reference + self-test
# ----------------------------------------------------------------------------
def _reference(x, w1, b1, w2, b2, gamma, beta, eps=1e-12):
    xf = x.astype(jnp.float32)
    h = jnp.dot(xf, w1.astype(jnp.float32)) + b1.astype(jnp.float32)
    h = 0.5 * h * (1.0 + jax.lax.erf(h * 0.7071067811865476))
    y = jnp.dot(h, w2.astype(jnp.float32)) + b2.astype(jnp.float32)
    z = y + xf
    mean = jnp.mean(z, axis=-1, keepdims=True)
    var = jnp.mean((z - mean) ** 2, axis=-1, keepdims=True)
    zn = (z - mean) / jnp.sqrt(var + eps)
    return zn * gamma.astype(jnp.float32) + beta.astype(jnp.float32)


def _make_params(key, H, dtype):
    H4 = 4 * H
    k_x, k_w1, k_b1, k_w2, k_b2 = jax.random.split(key, 5)
    w1 = (jax.random.normal(k_w1, (H, H4), jnp.float32) / jnp.sqrt(H)).astype(dtype)
    b1 = (jax.random.normal(k_b1, (H4,), jnp.float32) * 0.02).astype(dtype)
    w2 = (jax.random.normal(k_w2, (H4, H), jnp.float32) / jnp.sqrt(H4)).astype(dtype)
    b2 = (jax.random.normal(k_b2, (H,), jnp.float32) * 0.02).astype(dtype)
    gamma = jnp.ones((H,), dtype)    # PyTorch LayerNorm default weight
    beta = jnp.zeros((H,), dtype)    # PyTorch LayerNorm default bias
    return k_x, w1, b1, w2, b2, gamma, beta


if __name__ == "__main__":
    key = jax.random.PRNGKey(0)

    # Case 1: small f32, default tiling -> resident-weights fast path.
    B, S, H = 2, 8, 32
    k_x, w1, b1, w2, b2, gamma, beta = _make_params(key, H, jnp.float32)
    x = jax.random.normal(k_x, (B, S, H), jnp.float32)
    out = jax.block_until_ready(feed_forward_net(x, w1, b1, w2, b2, gamma, beta))
    ref = _reference(x, w1, b1, w2, b2, gamma, beta)
    assert out.shape == (B, S, H)
    assert jnp.allclose(out, ref, atol=1e-4, rtol=1e-4), "case1 mismatch vs reference"

    # Case 2: rows not a power-of-two tile, forced streamed (k-tiled) path with
    # multiple k-steps over the 4H axis -> exercises the f32 accumulator.
    B2, S2, H2 = 2, 5, 64
    k_x2, w1b, b1b, w2b, b2b, gb, bb = _make_params(jax.random.PRNGKey(1), H2, jnp.float32)
    x2 = jax.random.normal(k_x2, (B2, S2, H2), jnp.float32)
    out2 = jax.block_until_ready(
        feed_forward_net(x2, w1b, b1b, w2b, b2b, gb, bb, k_tile=128))
    ref2 = _reference(x2, w1b, b1b, w2b, b2b, gb, bb)
    assert out2.shape == (B2, S2, H2)
    assert jnp.allclose(out2, ref2, atol=1e-4, rtol=1e-4), "case2 mismatch vs reference"

    # Case 2b: forced tiny row tile that does NOT divide rows -> exercises the
    # pad/slice fallback + multiple row tiles + streamed accumulator.
    out2b = jax.block_until_ready(
        feed_forward_net(x2, w1b, b1b, w2b, b2b, gb, bb, tile_rows=8, k_tile=128))
    assert jnp.allclose(out2b, ref2, atol=1e-4, rtol=1e-4), "case2b mismatch vs reference"

    # Case 3: bf16 weights/activations (f32 accumulation + f32 AddNorm inside),
    # exact-erf GELU forced for parity regardless of chip generation.
    xb = x.astype(jnp.bfloat16)
    w1c, b1c, w2c, b2c = (t.astype(jnp.bfloat16) for t in (w1, b1, w2, b2))
    gc, bc = gamma.astype(jnp.bfloat16), beta.astype(jnp.bfloat16)
    out3 = jax.block_until_ready(
        feed_forward_net(xb, w1c, b1c, w2c, b2c, gc, bc, approx_gelu=False))
    ref3 = _reference(xb, w1c, b1c, w2c, b2c, gc, bc)
    assert out3.shape == (B, S, H)
    assert jnp.allclose(out3.astype(jnp.float32), ref3, atol=1e-1, rtol=1e-1), \
        "case3 (bf16) mismatch vs reference"

    print("KERNEL_OK")
</pallas_src>

<mosaic_0001>
module attributes {stable_mosaic.version = 11 : i64} {
  func.func @ffn_kernel_resident(%arg0: i32, %arg1: memref<16x32xf32, #tpu.memory_space<vmem>>, %arg2: memref<32x128xf32, #tpu.memory_space<vmem>>, %arg3: memref<1x128xf32, #tpu.memory_space<vmem>>, %arg4: memref<128x32xf32, #tpu.memory_space<vmem>>, %arg5: memref<1x32xf32, #tpu.memory_space<vmem>>, %arg6: memref<1x32xf32, #tpu.memory_space<vmem>>, %arg7: memref<1x32xf32, #tpu.memory_space<vmem>>, %arg8: memref<16x32xf32, #tpu.memory_space<vmem>>) attributes {dimension_semantics = [#tpu.dimension_semantics<parallel>], iteration_bounds = array<i64: 1>, scalar_prefetch = 0 : i64, scratch_operands = 0 : i64, tpu.core_type = #tpu.core_type<tc>, window_params = [{transform_indices = @transform_0, window_bounds = array<i64: 16, 32>}, {pipeline_mode = #tpu.pipeline_mode<synchronous>, transform_indices = @transform_1, window_bounds = array<i64: 32, 128>}, {pipeline_mode = #tpu.pipeline_mode<synchronous>, transform_indices = @transform_2, window_bounds = array<i64: 1, 128>}, {pipeline_mode = #tpu.pipeline_mode<synchronous>, transform_indices = @transform_3, window_bounds = array<i64: 128, 32>}, {pipeline_mode = #tpu.pipeline_mode<synchronous>, transform_indices = @transform_4, window_bounds = array<i64: 1, 32>}, {pipeline_mode = #tpu.pipeline_mode<synchronous>, transform_indices = @transform_5, window_bounds = array<i64: 1, 32>}, {pipeline_mode = #tpu.pipeline_mode<synchronous>, transform_indices = @transform_6, window_bounds = array<i64: 1, 32>}, {transform_indices = @transform_7, window_bounds = array<i64: 16, 32>}]} {
    %c0 = arith.constant 0 : index
    %c0_0 = arith.constant 0 : index
    %0 = vector.load %arg1[%c0, %c0_0] : memref<16x32xf32, #tpu.memory_space<vmem>>, vector<16x32xf32>
    %c0_1 = arith.constant 0 : index
    %c0_2 = arith.constant 0 : index
    %1 = vector.load %arg2[%c0_1, %c0_2] : memref<32x128xf32, #tpu.memory_space<vmem>>, vector<32x128xf32>
    %cst = arith.constant dense<0.000000e+00> : vector<16x128xf32>
    %2 = tpu.matmul %0, %1, %cst {dimension_numbers = #tpu.dot_dimension_numbers<[1], [0], [0], [1], [0, 0, 1, 1], [], []>} : vector<16x32xf32>, vector<32x128xf32>, vector<16x128xf32> -> vector<16x128xf32>
    %c0_3 = arith.constant 0 : index
    %c0_4 = arith.constant 0 : index
    %3 = vector.load %arg3[%c0_3, %c0_4] : memref<1x128xf32, #tpu.memory_space<vmem>>, vector<1x128xf32>
    %4 = vector.broadcast %3 : vector<1x128xf32> to vector<16x128xf32>
    %5 = arith.addf %2, %4 : vector<16x128xf32>
    %cst_5 = arith.constant 5.000000e-01 : f32
    %6 = vector.broadcast %cst_5 : f32 to vector<16x128xf32>
    %7 = arith.mulf %6, %5 : vector<16x128xf32>
    %cst_6 = arith.constant 0.707106769 : f32
    %8 = vector.broadcast %cst_6 : f32 to vector<16x128xf32>
    %9 = arith.mulf %5, %8 : vector<16x128xf32>
    %10 = math.erf %9 : vector<16x128xf32>
    %cst_7 = arith.constant 1.000000e+00 : f32
    %11 = vector.broadcast %cst_7 : f32 to vector<16x128xf32>
    %12 = arith.addf %11, %10 : vector<16x128xf32>
    %13 = arith.mulf %7, %12 : vector<16x128xf32>
    %c0_8 = arith.constant 0 : index
    %c0_9 = arith.constant 0 : index
    %14 = vector.load %arg4[%c0_8, %c0_9] : memref<128x32xf32, #tpu.memory_space<vmem>>, vector<128x32xf32>
    %cst_10 = arith.constant dense<0.000000e+00> : vector<16x32xf32>
    %15 = tpu.matmul %13, %14, %cst_10 {dimension_numbers = #tpu.dot_dimension_numbers<[1], [0], [0], [1], [0, 0, 1, 1], [], []>} : vector<16x128xf32>, vector<128x32xf32>, vector<16x32xf32> -> vector<16x32xf32>
    %c0_11 = arith.constant 0 : index
    %c0_12 = arith.constant 0 : index
    %16 = vector.load %arg5[%c0_11, %c0_12] : memref<1x32xf32, #tpu.memory_space<vmem>>, vector<1x32xf32>
    %17 = vector.broadcast %16 : vector<1x32xf32> to vector<16x32xf32>
    %18 = arith.addf %15, %17 : vector<16x32xf32>
    %19 = arith.addf %18, %0 : vector<16x32xf32>
    %cst_13 = arith.constant dense<0.000000e+00> : vector<16xf32>
    %20 = vector.multi_reduction <add>, %19, %cst_13 [1] : vector<16x32xf32> to vector<16xf32>
    %21 = vector.shape_cast %20 : vector<16xf32> to vector<16x1xf32>
    %cst_14 = arith.constant 3.200000e+01 : f32
    %22 = vector.broadcast %cst_14 : f32 to vector<16x1xf32>
    %23 = arith.divf %21, %22 : vector<16x1xf32>
    %24 = vector.broadcast %23 : vector<16x1xf32> to vector<16x32xf32>
    %25 = arith.subf %19, %24 : vector<16x32xf32>
    %26 = arith.mulf %25, %25 : vector<16x32xf32>
    %cst_15 = arith.constant dense<0.000000e+00> : vector<16xf32>
    %27 = vector.multi_reduction <add>, %26, %cst_15 [1] : vector<16x32xf32> to vector<16xf32>
    %28 = vector.shape_cast %27 : vector<16xf32> to vector<16x1xf32>
    %cst_16 = arith.constant 3.200000e+01 : f32
    %29 = vector.broadcast %cst_16 : f32 to vector<16x1xf32>
    %30 = arith.divf %28, %29 : vector<16x1xf32>
    %cst_17 = arith.constant 9.99999996E-13 : f32
    %31 = vector.broadcast %cst_17 : f32 to vector<16x1xf32>
    %32 = arith.addf %30, %31 : vector<16x1xf32>
    %33 = math.rsqrt %32 : vector<16x1xf32>
    %34 = vector.broadcast %33 : vector<16x1xf32> to vector<16x32xf32>
    %35 = arith.mulf %25, %34 : vector<16x32xf32>
    %c0_18 = arith.constant 0 : index
    %c0_19 = arith.constant 0 : index
    %36 = vector.load %arg6[%c0_18, %c0_19] : memref<1x32xf32, #tpu.memory_space<vmem>>, vector<1x32xf32>
    %37 = vector.broadcast %36 : vector<1x32xf32> to vector<16x32xf32>
    %38 = arith.mulf %35, %37 : vector<16x32xf32>
    %c0_20 = arith.constant 0 : index
    %c0_21 = arith.constant 0 : index
    %39 = vector.load %arg7[%c0_20, %c0_21] : memref<1x32xf32, #tpu.memory_space<vmem>>, vector<1x32xf32>
    %40 = vector.broadcast %39 : vector<1x32xf32> to vector<16x32xf32>
    %41 = arith.addf %38, %40 : vector<16x32xf32>
    %c0_22 = arith.constant 0 : index
    %c0_23 = arith.constant 0 : index
    %42 = vector.load %arg8[%c0_22, %c0_23] : memref<16x32xf32, #tpu.memory_space<vmem>>, vector<16x32xf32>
    tpu.vector_store %arg8[%c0_22, %c0_23], %41 {strides = array<i32>} : memref<16x32xf32, #tpu.memory_space<vmem>>, vector<16x32xf32>,
    return
  }
  func.func @transform_0(%arg0: i32) -> (i32, i32) {
    %c0_i32 = arith.constant 0 : i32
    %c0_i32_0 = arith.constant 0 : i32
    return %arg0, %c0_i32 : i32, i32
  }
  func.func @transform_1(%arg0: i32) -> (i32, i32) {
    %c0_i32 = arith.constant 0 : i32
    %c0_i32_0 = arith.constant 0 : i32
    %c0_i32_1 = arith.constant 0 : i32
    return %c0_i32, %c0_i32_0 : i32, i32
  }
  func.func @transform_2(%arg0: i32) -> (i32, i32) {
    %c0_i32 = arith.constant 0 : i32
    %c0_i32_0 = arith.constant 0 : i32
    %c0_i32_1 = arith.constant 0 : i32
    return %c0_i32, %c0_i32_0 : i32, i32
  }
  func.func @transform_3(%arg0: i32) -> (i32, i32) {
    %c0_i32 = arith.constant 0 : i32
    %c0_i32_0 = arith.constant 0 : i32
    %c0_i32_1 = arith.constant 0 : i32
    return %c0_i32, %c0_i32_0 : i32, i32
  }
  func.func @transform_4(%arg0: i32) -> (i32, i32) {
    %c0_i32 = arith.constant 0 : i32
    %c0_i32_0 = arith.constant 0 : i32
    %c0_i32_1 = arith.constant 0 : i32
    return %c0_i32, %c0_i32_0 : i32, i32
  }
  func.func @transform_5(%arg0: i32) -> (i32, i32) {
    %c0_i32 = arith.constant 0 : i32
    %c0_i32_0 = arith.constant 0 : i32
    %c0_i32_1 = arith.constant 0 : i32
    return %c0_i32, %c0_i32_0 : i32, i32
  }
  func.func @transform_6(%arg0: i32) -> (i32, i32) {
    %c0_i32 = arith.constant 0 : i32
    %c0_i32_0 = arith.constant 0 : i32
    %c0_i32_1 = arith.constant 0 : i32
    return %c0_i32, %c0_i32_0 : i32, i32
  }
  func.func @transform_7(%arg0: i32) -> (i32, i32) {
    %c0_i32 = arith.constant 0 : i32
    %c0_i32_0 = arith.constant 0 : i32
    return %arg0, %c0_i32 : i32, i32
  }
}

</mosaic_0001>

<bundles_post_ra>
// kernel: _ffn.1
= control target key start
LH: loop header
LB: loop body
LE: loop exit
PB: predicated region body
PF: predicated region fallthrough
CT: control target
= control target key end

     0   :  { %vm40_vm0 = vcmask 261120   ;;  %s544_s0 = inlined_call_operand.vmem [shape: f32[16,32], index: 0, kind: input, shape index: {}]   ;;  %s545_s1 = inlined_call_operand.vmem [shape: f32[32,128], index: 1, kind: input, shape index: {}]   ;;  %s546_s2 = inlined_call_operand.vmem [shape: f32[1,128], index: 2, kind: input, shape index: {}]   ;;  %s547_s3 = inlined_call_operand.vmem [shape: f32[128,32], index: 3, kind: input, shape index: {}]   ;;  %s548_s4 = inlined_call_operand.vmem [shape: f32[1,32], index: 4, kind: input, shape index: {}]   ;;  %s549_s5 = inlined_call_operand.vmem [shape: f32[1,32], index: 5, kind: input, shape index: {}]   ;;  %s550_s6 = inlined_call_operand.vmem [shape: f32[1,32], index: 6, kind: input, shape index: {}]   ;;  %s551_s7 = inlined_call_operand.hbm [shape: f32[16,32], index: 7, kind: output, shape index: {}]  }
   0x1   :  { %v32_v0 = vld [vmem:[%s545_s1 + $0x18] sm:$0xff]  ;;  %v31_v1 = vld [vmem:[%s545_s1 + $0x10] sm:$0xff]  ;;  %v456_v2 = vld [vmem:[%s544_s0] sm:$0xff] }
   0x2   :  { %325 = vmatprep.subr.mxu0 %v32_v0  ;;  %v30_v3 = vld [vmem:[%s545_s1 + $0x8] sm:$0xff]  ;;  %333 = vmatprep.mubr.msk.f32.mxu0 %vm40_vm0, %v456_v2  ;;  %v147_v4 = vld [vmem:[%s547_s3 + $0x78] sm:$0xff]  ;;  %v146_v5 = vld [vmem:[%s547_s3 + $0x70] sm:$0xff] }
   0x3   :  { %326 = vmatpush3.msra.mxu0 %v32_v0  ;;  %336 = vmatprep.subr.mxu1 %v147_v4 }
   0x4   :  { %327 = vmatprep.subr.mxu0 %v31_v1 }
   0x5   :  { %12 = vsyncpa [#allocation3], 0  ;;  %328 = vmatpush3.msra.mxu0 %v31_v1  ;;  %v29_v6 = vld [vmem:[%s545_s1] sm:$0xff]  ;;  %337 = vmatpush3.msra.mxu1 %v147_v4  ;;  %v145_v7 = vld [vmem:[%s547_s3 + $0x68] sm:$0xff]  ;;  %s404_s23 = smov [#allocation2]  }
   0x6   :  { %329 = vmatprep.subr.mxu0 %v30_v3  ;;  %338 = vmatprep.subr.mxu1 %v146_v5  ;;  %v478_v8 = vld [vmem:[%s544_s0 + $0x8] sm:$0xff]  ;;  %v144_v9 = vld [vmem:[%s547_s3 + $0x60] sm:$0xff]  ;;  %v143_v10 = vld [vmem:[%s547_s3 + $0x58] sm:$0xff]  ;;  %s284_s24 = sshll.u32 %s404_s23, 4  ;;  %s285_s24 = int_to_ptr.vmem [resolvable:$true] %s284_s24 }
   0x7   :  { %330 = vmatpush3.msra.mxu0 %v30_v3  ;;  %339 = vmatpush3.msra.mxu1 %v146_v5  ;;  %v142_v11 = vld [vmem:[%s547_s3 + $0x50] sm:$0xff]  ;;  %v141_v12 = vld [vmem:[%s547_s3 + $0x48] sm:$0xff]  ;;  %v140_v13 = vld [vmem:[%s547_s3 + $0x40] sm:$0xff]  ;;  %s382_s25 = scalar_lea.vmem %s285_s24, 256  ;;  %p387_p1 = scmp.lt.s32.totalorder %s285_s24, %s285_s24 }
   0x8   :  { %331 = vmatprep.subr.mxu0 %v29_v6  ;;  %340 = vmatprep.subr.mxu1 %v145_v7  ;;  %v139_v14 = vld [vmem:[%s547_s3 + $0x38] sm:$0xff]  ;;  %v138_v15 = vld [vmem:[%s547_s3 + $0x30] sm:$0xff]  ;;  %v137_v16 = vld [vmem:[%s547_s3 + $0x28] sm:$0xff]  ;;  %p383_p0 = scmp.ne.s32.totalorder %s285_s24, %s382_s25  ;;  %p388_p2 = scmp.lt.s32.totalorder %s382_s25, %s382_s25 }
   0x9   :  { %332 = vmatpush3.msra.mxu0 %v29_v6  ;;  %341 = vmatpush3.msra.mxu1 %v145_v7  ;;  %v136_v17 = vld [vmem:[%s547_s3 + $0x20] sm:$0xff]  ;;  %v135_v18 = vld [vmem:[%s547_s3 + $0x18] sm:$0xff]  ;;  %v134_v19 = vld [vmem:[%s547_s3 + $0x10] sm:$0xff] }
   0xa   :  { %334 = vmatmul.mubr.msk.f32.vlgmr.msra.gmra.mxu0 %vm40_vm0, %v478_v8  ;;  %342 = vmatprep.subr.mxu1 %v144_v9  ;;  %v133_v20 = vld [vmem:[%s547_s3 + $0x8] sm:$0xff]  ;;  %v132_v21 = vld [vmem:[%s547_s3] sm:$0xff]  ;;  %p389_p3 = por %p388_p2, %p387_p1 }
   0xb   :  { %343 = vmatpush3.msra.mxu1 %v144_v9  ;;  %v295_v22 = vld [vmem:[%s546_s2] ss:$0 sm:$0xff] }
   0xc   :  { %344 = vmatprep.subr.mxu1 %v143_v10  ;;  %v298_v38 = vld [vmem:[%s548_s4] ss:$0 sm:$0xff]  ;;  %p390_p4 = pnand %p389_p3, %p383_p0 }
   0xd   :  { %345 = vmatpush3.msra.mxu1 %v143_v10  ;;  %v299_v63 = vld [vmem:[%s549_s5] ss:$0 sm:$0xff] }
   0xe   :  { %346 = vmatprep.subr.mxu1 %v142_v11  ;;  %v300_v1 = vld [vmem:[%s550_s6] ss:$0 sm:$0xff] }
   0xf   :  { %347 = vmatpush3.msra.mxu1 %v142_v11 }
  0x10   :  { %348 = vmatprep.subr.mxu1 %v141_v12 }
  0x11   :  { %349 = vmatpush3.msra.mxu1 %v141_v12 }
  0x12   :  { %350 = vmatprep.subr.mxu1 %v140_v13 }
  0x13   :  { %351 = vmatpush3.msra.mxu1 %v140_v13 }
  0x14   :  { %352 = vmatprep.subr.mxu1 %v139_v14 }
  0x15   :  { %353 = vmatpush3.msra.mxu1 %v139_v14 }
  0x16   :  { %354 = vmatprep.subr.mxu1 %v138_v15 }
  0x17   :  { %355 = vmatpush3.msra.mxu1 %v138_v15 }
  0x18   :  { %356 = vmatprep.subr.mxu1 %v137_v16 }
  0x19   :  { %357 = vmatpush3.msra.mxu1 %v137_v16 }
  0x1a   :  { %358 = vmatprep.subr.mxu1 %v136_v17 }
  0x1b   :  { %359 = vmatpush3.msra.mxu1 %v136_v17 }
  0x1c   :  { %360 = vmatprep.subr.mxu1 %v135_v18 }
  0x1d   :  { %361 = vmatpush3.msra.mxu1 %v135_v18 }
  0x1e   :  { %362 = vmatprep.subr.mxu1 %v134_v19 }
  0x1f   :  { %363 = vmatpush3.msra.mxu1 %v134_v19 }
  0x20   :  { %364 = vmatprep.subr.mxu1 %v133_v20 }
  0x21   :  { %365 = vmatpush3.msra.mxu1 %v133_v20 }
  0x22   :  { %366 = vmatprep.subr.mxu1 %v132_v21 }
  0x23   :  { %367 = vmatpush3.msra.mxu1 %v132_v21 }
  0xca   :  { %v335_v23 = vpop.f32.mrf.mxu0 }
  0xcb   :  { %v119_v24 = vadd.f32 %v335_v23, %v295_v22 }
  0xcc   :  { %v113_v25 = vpop.f32.mrf.mxu0 }
  0xcd   :  { %v125_v26 = vmul.f32 0.70710677, %v119_v24  ;;  %v114_v27 = vadd.f32 %v295_v22, %v113_v25  ;;  %v123_v34 = vmul.f32 0.5, %v119_v24 }
  0xcf   :  { %374 = verf.f32 %v125_v26  ;;  %v124_v28 = vmul.f32 0.70710677, %v114_v27  ;;  %v122_v32 = vmul.f32 0.5, %v114_v27 }
  0xd1   :  { %376 = verf.f32 %v124_v28 }
  0xdc   :  { %v375_v29 = vpop.eup %374 }
  0xdd   :  { %v129_v31 = vadd.f32 1.0, %v375_v29 }
  0xde   :  { %v377_v30 = vpop.eup %376 }
  0xdf   :  { %v128_v33 = vadd.f32 1.0, %v377_v30  ;;  %v131_v36 = vmul.f32 %v129_v31, %v123_v34 }
  0xe1   :  { %v130_v35 = vmul.f32 %v128_v33, %v122_v32 }
  0xe3   :  { %368 = vmatprep.mubr.f32.mxu1 %v130_v35 }
  0xe4   :  { %369 = vmatmul.mubr.f32.vlgmr.msra.gmra.mxu1 %v131_v36 }
 0x1a4   :  { %v370_v37 = vpop.f32.mrf.mxu1 }
 0x1a5   :  { %v227_v40 = vadd.f32 %v370_v37, %v298_v38 }
 0x1a6   :  { %v221_v39 = vpop.f32.mrf.mxu1 }
 0x1a7   :  { %v222_v41 = vadd.f32 %v298_v38, %v221_v39  ;;  %v231_v44 = vadd.f32 %v227_v40, %v478_v8 }
 0x1a9   :  { %v230_v42 = vadd.f32 %v222_v41, %v456_v2  ;;  %v235_v45 = vsel %vm40_vm0, %v231_v44, 0.0 }
 0x1ab   :  { %v232_v43 = vsel %vm40_vm0, %v230_v42, 0.0 }
 0x1ac   :  { %233 = vadd.xlane.f32.xlu0 %v232_v43 }
 0x1b0   :  { %236 = vadd.xlane.f32.xlu0 %v235_v45 }
 0x235   :  { %v234_v46 = vpop.xlane.xlu0 %233 }
 0x236   :  { %v239_v47 = vmul.f32 0.03125, %v234_v46 }
 0x238   :  { %v241_v48 = vsub.f32 %v230_v42, %v239_v47 }
 0x239   :  { %v237_v49 = vpop.xlane.xlu0 %236 }
 0x23a   :  { %v240_v50 = vmul.f32 0.03125, %v237_v49  ;;  %v243_v51 = vmul.f32 %v241_v48, %v241_v48 }
 0x23c   :  { %v242_v52 = vsub.f32 %v231_v44, %v240_v50  ;;  %v245_v53 = vsel %vm40_vm0, %v243_v51, 0.0 }
 0x23d   :  { %246 = vadd.xlane.f32.xlu1 %v245_v53 }
 0x23e   :  { %v244_v54 = vmul.f32 %v242_v52, %v242_v52 }
 0x240   :  { %v248_v55 = vsel %vm40_vm0, %v244_v54, 0.0 }
 0x241   :  { %249 = vadd.xlane.f32.xlu1 %v248_v55 }
 0x2c6   :  { %v247_v56 = vpop.xlane.xlu1 %246 }
 0x2c7   :  { %v251_v57 = vmul.f32 0.03125, %v247_v56 }
 0x2c9   :  { %v253_v58 = vadd.f32 1e-12, %v251_v57 }
 0x2ca   :  { %v250_v59 = vpop.xlane.xlu1 %249 }
 0x2cb   :  { %378 = vrsqrt.f32 %v253_v58  ;;  %v252_v60 = vmul.f32 0.03125, %v250_v59 }
 0x2cd   :  { %v254_v61 = vadd.f32 1e-12, %v252_v60 }
 0x2cf   :  { %380 = vrsqrt.f32 %v254_v61 }
 0x2d8   :  { %v379_v62 = vpop.eup %378 }
 0x2d9   :  { %v257_v0 = vmul.f32 %v379_v62, %v241_v48 }
 0x2db   :  { %v266_v2 = vmul.f32 %v299_v63, %v257_v0 }
 0x2dc   :  { %v381_v3 = vpop.eup %380 }
 0x2dd   :  { %v258_v4 = vmul.f32 %v381_v3, %v242_v52  ;;  %v275_v5 = vadd.f32 %v300_v1, %v266_v2 }
 0x2df   :  { %v267_v6 = vmul.f32 %v299_v63, %v258_v4  ;;  %277 = vst.msk [vmem:[#allocation2] sm:$0xff] %vm40_vm0, %v275_v5 }
 0x2e1   :  { %v276_v7 = vadd.f32 %v300_v1, %v267_v6 }
 0x2e3   :  { %278 = vst.msk [vmem:[#allocation2 + $0x8] sm:$0xff] %vm40_vm0, %v276_v7 }
 0x2e4   :  { %393 = shalt.err (!%p390_p4)
}
 0x2e5   :  { %s405_s5 = smov 128   ;;  %s406_s6 = smov 8  }
 0x2e6   :  { %290 = dma.vmem_to_hbm [thread:$0]  %s285_s24, 256, %s551_s7, [#allocation3], %s405_s5, %s405_s5, %s406_s6  }
 0x2e7   :  { %402 = dma.done.wait [#allocation3], 256  }
 0x2e8   :  { %403 = vsyncadd [#allocation3], 4294967040 }
 0x2e9   :  { %294 = vsyncpa [#allocation3], 1 }

</bundles_post_ra>
